<compile_context>
chip_gen: v6e
topology: v6e:2x2x1
jax: 0.10.0
libtpu: 0.0.40
codegen_flags: <defaults>
</compile_context>

<pallas_src>
import functools

import jax
import jax.numpy as jnp
from jax.experimental import pallas as pl
from jax.experimental.pallas import tpu as pltpu


def channel_attention_kernel(x_ref, w1_ref, w2_ref, o_ref, sum_sc, max_sc, *,
                             inv_hw, n_lane_blocks):
    # x_ref : (1, C, T_HW)  spatial tile of one batch element
    # w1_ref: (Cr, C)       fc1 weight (1x1 conv, kernel dims squeezed)
    # w2_ref: (C, Cr)       fc2 weight (1x1 conv, kernel dims squeezed)
    # o_ref : (1, C, 1)     channel-attention weights for this batch element
    # sum_sc / max_sc: (C, 128) (or (C, 1) fallback) f32 running pooled stats
    k = pl.program_id(1)

    @pl.when(k == 0)
    def _init():
        sum_sc[...] = jnp.zeros_like(sum_sc)
        max_sc[...] = jnp.full_like(max_sc, -jnp.inf)

    # ---- streaming phase: accumulate this spatial tile in f32 ----------------
    x = x_ref[0].astype(jnp.float32)                       # (C, T_HW)

    if n_lane_blocks is None:
        # Generic fallback (T_HW not a multiple of 128): per-tile lane reduce.
        sum_sc[...] = sum_sc[...] + jnp.sum(x, axis=-1, keepdims=True)
        max_sc[...] = jnp.maximum(max_sc[...], jnp.max(x, axis=-1, keepdims=True))
    else:
        # Lane-blocked path: static 128-lane chunks, pure VPU adds / maxes.
        s = sum_sc[...]
        m = max_sc[...]
        for j in range(n_lane_blocks):
            chunk = x[:, j * 128:(j + 1) * 128]            # (C, 128), lane-aligned
            s = s + chunk
            m = jnp.maximum(m, chunk)
        sum_sc[...] = s
        max_sc[...] = m

    # ---- epilogue (once per batch element): fused shared MLP + sigmoid --------
    @pl.when(k == pl.num_programs(1) - 1)
    def _finalize():
        avg = jnp.sum(sum_sc[...], axis=-1, keepdims=True) * inv_hw   # (C, 1)
        mx = jnp.max(max_sc[...], axis=-1, keepdims=True)             # (C, 1)

        # Stack [avg | max] into a (C, 2) matrix so fc1/SiLU/fc2 run once over
        # both pooled vectors (built with iota+where: always-supported ops).
        col = jax.lax.broadcasted_iota(jnp.int32, (avg.shape[0], 2), 1)
        pooled = jnp.where(col == 0, avg, mx)                         # (C, 2)

        w1 = w1_ref[...].astype(jnp.float32)
        w2 = w2_ref[...].astype(jnp.float32)
        h = jnp.dot(w1, pooled, preferred_element_type=jnp.float32)   # fc1 -> (Cr, 2)
        h = h * jax.nn.sigmoid(h)                                     # SiLU
        o = jnp.dot(w2, h, preferred_element_type=jnp.float32)        # fc2 -> (C, 2)
        # avg_out + max_out via static column slices (no reduce), then sigmoid.
        att = jax.nn.sigmoid(o[:, 0:1] + o[:, 1:2])                   # (C, 1)
        o_ref[0] = att.astype(o_ref.dtype)


def _choose_hw_tile(hw, c, itemsize, max_tile_bytes):
    """Largest multiple-of-128 divisor of hw with a (C, tile) block <= max_tile_bytes.

    Keeps 2x double-buffered x tiles well inside scoped VMEM on all TPU
    generations (incl. v7x's smaller VMEM).  Falls back to the full spatial
    extent when hw has no multiple-of-128 divisor (a block's last dim must be a
    multiple of 128 or equal to the full dim).
    """
    if hw % 128 != 0:
        return hw
    max_lanes = max(128, (max_tile_bytes // max(c * itemsize, 1)) // 128 * 128)
    best = 128
    t = 256
    while t <= hw and t <= max_lanes:
        if hw % t == 0:
            best = t
        t += 128
    return best


def channel_attention(x, w1, w2, *, hw_tile=None, max_tile_bytes=4 * 1024 * 1024):
    """x: (N, C, H, W); w1: (C//16, C); w2: (C, C//16) -> (N, C, 1, 1)."""
    N, C, H, W = x.shape
    Cr = w1.shape[0]
    assert w1.shape == (Cr, C) and w2.shape == (C, Cr)
    HW = H * W

    if hw_tile is None:
        hw_tile = _choose_hw_tile(HW, C, jnp.dtype(x.dtype).itemsize, max_tile_bytes)
    assert HW % hw_tile == 0, "spatial tile must divide H*W"
    assert hw_tile == HW or hw_tile % 128 == 0, "tile must be lane-aligned or full"
    n_hw_steps = HW // hw_tile

    lane_blocked = (hw_tile % 128 == 0)
    n_lane_blocks = hw_tile // 128 if lane_blocked else None
    acc_width = 128 if lane_blocked else 1

    x3 = x.reshape(N, C, HW)
    kernel = functools.partial(channel_attention_kernel,
                               inv_hw=1.0 / HW,
                               n_lane_blocks=n_lane_blocks)

    out = pl.pallas_call(
        kernel,
        out_shape=jax.ShapeDtypeStruct((N, C, 1), x.dtype),
        grid=(N, n_hw_steps),                      # reduction (HW) axis last
        in_specs=[
            # Streamed spatial tiles of x.
            pl.BlockSpec((1, C, hw_tile), lambda n, k: (n, 0, k)),
            # Weights: constant block index -> resident in VMEM, no per-step DMA.
            pl.BlockSpec((Cr, C), lambda n, k: (0, 0)),
            pl.BlockSpec((C, Cr), lambda n, k: (0, 0)),
        ],
        out_specs=pl.BlockSpec((1, C, 1), lambda n, k: (n, 0, 0)),
        scratch_shapes=[
            pltpu.VMEM((C, acc_width), jnp.float32),   # running per-lane sums
            pltpu.VMEM((C, acc_width), jnp.float32),   # running per-lane maxes
        ],
        compiler_params=pltpu.CompilerParams(
            dimension_semantics=("parallel", "arbitrary")),
    )(x3, w1, w2)
    return out.reshape(N, C, 1, 1)


def channel_attention_ref(x, w1, w2):
    # Pure-JAX reference mirroring the PyTorch forward exactly.
    avg = jnp.mean(x, axis=(2, 3))                 # (N, C)
    mx = jnp.max(x, axis=(2, 3))                   # (N, C)

    def shared_mlp(v):
        h = v @ w1.T                               # fc1: (N, Cr)
        h = h * jax.nn.sigmoid(h)                  # SiLU
        return h @ w2.T                            # fc2: (N, C)

    out = jax.nn.sigmoid(shared_mlp(avg) + shared_mlp(mx))
    return out[:, :, None, None]


if __name__ == "__main__":
    key = jax.random.PRNGKey(0)
    N, C, H, W = 2, 64, 16, 16                     # in_planes=64 -> in_planes//16 = 4
    Cr = C // 16

    kx, k1, k2, kx2 = jax.random.split(key, 4)
    x = jax.random.normal(kx, (N, C, H, W), dtype=jnp.float32)
    # Synthetic fc1 (Conv2d C->Cr, 1x1, no bias) and fc2 (Conv2d Cr->C, 1x1,
    # no bias) weights with the 1x1 kernel dims squeezed away.
    w1 = jax.random.normal(k1, (Cr, C), dtype=jnp.float32) * (1.0 / jnp.sqrt(C))
    w2 = jax.random.normal(k2, (C, Cr), dtype=jnp.float32) * (1.0 / jnp.sqrt(Cr))

    ref = channel_attention_ref(x, w1, w2)

    # Auto-chosen tile (HW=256 -> single 256-lane tile: init + finalize path).
    out_auto = jax.block_until_ready(channel_attention(x, w1, w2))
    # Forced 128-lane tile (2 spatial steps: exercises running-sum / max path).
    out_tiled = jax.block_until_ready(channel_attention(x, w1, w2, hw_tile=128))

    assert out_auto.shape == (N, C, 1, 1)
    assert jnp.allclose(out_auto, ref, atol=1e-5, rtol=1e-5), "auto-tile mismatch"
    assert jnp.allclose(out_tiled, ref, atol=1e-5, rtol=1e-5), "hw-tiled mismatch"

    # Non-128-aligned spatial extent (HW=100): exercises the generic fallback.
    x2 = jax.random.normal(kx2, (N, C, 10, 10), dtype=jnp.float32)
    ref2 = channel_attention_ref(x2, w1, w2)
    out2 = jax.block_until_ready(channel_attention(x2, w1, w2))
    assert jnp.allclose(out2, ref2, atol=1e-5, rtol=1e-5), "fallback mismatch"

    print("KERNEL_OK")
</pallas_src>

<mosaic_0001>
module attributes {stable_mosaic.version = 11 : i64} {
  func.func @channel_attention_kernel(%arg0: i32, %arg1: i32, %arg2: memref<1x64x256xf32, #tpu.memory_space<vmem>>, %arg3: memref<4x64xf32, #tpu.memory_space<vmem>>, %arg4: memref<64x4xf32, #tpu.memory_space<vmem>>, %arg5: memref<1x64x1xf32, #tpu.memory_space<vmem>>, %arg6: memref<64x128xf32, #tpu.memory_space<vmem>>, %arg7: memref<64x128xf32, #tpu.memory_space<vmem>>) attributes {dimension_semantics = [#tpu.dimension_semantics<parallel>, #tpu.dimension_semantics<arbitrary>], iteration_bounds = array<i64: 2, 1>, scalar_prefetch = 0 : i64, scratch_operands = 2 : i64, tpu.core_type = #tpu.core_type<tc>, window_params = [{transform_indices = @transform_0, window_bounds = array<i64: 1, 64, 256>}, {pipeline_mode = #tpu.pipeline_mode<synchronous>, transform_indices = @transform_1, window_bounds = array<i64: 4, 64>}, {pipeline_mode = #tpu.pipeline_mode<synchronous>, transform_indices = @transform_2, window_bounds = array<i64: 64, 4>}, {transform_indices = @transform_3, window_bounds = array<i64: 1, 64, 1>}]} {
    %c0_i32 = arith.constant 0 : i32
    %0 = arith.cmpi eq, %arg1, %c0_i32 : i32
    %1 = arith.extui %0 : i1 to i32
    %c0_i32_0 = arith.constant 0 : i32
    %2 = arith.cmpi ne, %1, %c0_i32_0 : i32
    scf.if %2 {
      %cst = arith.constant 0.000000e+00 : f32
      %18 = vector.broadcast %cst : f32 to vector<64x128xf32>
      %c0_13 = arith.constant 0 : index
      %c0_14 = arith.constant 0 : index
      %19 = vector.load %arg6[%c0_13, %c0_14] : memref<64x128xf32, #tpu.memory_space<vmem>>, vector<64x128xf32>
      tpu.vector_store %arg6[%c0_13, %c0_14], %18 {strides = array<i32>} : memref<64x128xf32, #tpu.memory_space<vmem>>, vector<64x128xf32>,
      %cst_15 = arith.constant 0xFF800000 : f32
      %20 = vector.broadcast %cst_15 : f32 to vector<64x128xf32>
      %c0_16 = arith.constant 0 : index
      %c0_17 = arith.constant 0 : index
      %21 = vector.load %arg7[%c0_16, %c0_17] : memref<64x128xf32, #tpu.memory_space<vmem>>, vector<64x128xf32>
      tpu.vector_store %arg7[%c0_16, %c0_17], %20 {strides = array<i32>} : memref<64x128xf32, #tpu.memory_space<vmem>>, vector<64x128xf32>,
    } else {
    }
    %c0 = arith.constant 0 : index
    %c0_1 = arith.constant 0 : index
    %c0_2 = arith.constant 0 : index
    %3 = vector.load %arg2[%c0, %c0_1, %c0_2] : memref<1x64x256xf32, #tpu.memory_space<vmem>>, vector<1x64x256xf32>
    %4 = vector.shape_cast %3 : vector<1x64x256xf32> to vector<64x256xf32>
    %c0_3 = arith.constant 0 : index
    %c0_4 = arith.constant 0 : index
    %5 = vector.load %arg6[%c0_3, %c0_4] : memref<64x128xf32, #tpu.memory_space<vmem>>, vector<64x128xf32>
    %c0_5 = arith.constant 0 : index
    %c0_6 = arith.constant 0 : index
    %6 = vector.load %arg7[%c0_5, %c0_6] : memref<64x128xf32, #tpu.memory_space<vmem>>, vector<64x128xf32>
    %7 = vector.extract_strided_slice %4 {offsets = [0, 0], sizes = [64, 128], strides = [1, 1]} : vector<64x256xf32> to vector<64x128xf32>
    %8 = arith.addf %5, %7 : vector<64x128xf32>
    %9 = arith.maximumf %6, %7 : vector<64x128xf32>
    %10 = vector.extract_strided_slice %4 {offsets = [0, 128], sizes = [64, 128], strides = [1, 1]} : vector<64x256xf32> to vector<64x128xf32>
    %11 = arith.addf %8, %10 : vector<64x128xf32>
    %12 = arith.maximumf %9, %10 : vector<64x128xf32>
    %c0_7 = arith.constant 0 : index
    %c0_8 = arith.constant 0 : index
    %13 = vector.load %arg6[%c0_7, %c0_8] : memref<64x128xf32, #tpu.memory_space<vmem>>, vector<64x128xf32>
    tpu.vector_store %arg6[%c0_7, %c0_8], %11 {strides = array<i32>} : memref<64x128xf32, #tpu.memory_space<vmem>>, vector<64x128xf32>,
    %c0_9 = arith.constant 0 : index
    %c0_10 = arith.constant 0 : index
    %14 = vector.load %arg7[%c0_9, %c0_10] : memref<64x128xf32, #tpu.memory_space<vmem>>, vector<64x128xf32>
    tpu.vector_store %arg7[%c0_9, %c0_10], %12 {strides = array<i32>} : memref<64x128xf32, #tpu.memory_space<vmem>>, vector<64x128xf32>,
    %c0_i32_11 = arith.constant 0 : i32
    %15 = arith.cmpi eq, %arg1, %c0_i32_11 : i32
    %16 = arith.extui %15 : i1 to i32
    %c0_i32_12 = arith.constant 0 : i32
    %17 = arith.cmpi ne, %16, %c0_i32_12 : i32
    scf.if %17 {
      %c0_13 = arith.constant 0 : index
      %c0_14 = arith.constant 0 : index
      %18 = vector.load %arg6[%c0_13, %c0_14] : memref<64x128xf32, #tpu.memory_space<vmem>>, vector<64x128xf32>
      %cst = arith.constant dense<0.000000e+00> : vector<64xf32>
      %19 = vector.multi_reduction <add>, %18, %cst [1] : vector<64x128xf32> to vector<64xf32>
      %20 = vector.shape_cast %19 : vector<64xf32> to vector<64x1xf32>
      %cst_15 = arith.constant 3.906250e-03 : f32
      %21 = vector.broadcast %cst_15 : f32 to vector<64x1xf32>
      %22 = arith.mulf %20, %21 : vector<64x1xf32>
      %c0_16 = arith.constant 0 : index
      %c0_17 = arith.constant 0 : index
      %23 = vector.load %arg7[%c0_16, %c0_17] : memref<64x128xf32, #tpu.memory_space<vmem>>, vector<64x128xf32>
      %cst_18 = arith.constant dense<0xFF800000> : vector<64xf32>
      %24 = vector.multi_reduction <maximumf>, %23, %cst_18 [1] : vector<64x128xf32> to vector<64xf32>
      %25 = vector.shape_cast %24 : vector<64xf32> to vector<64x1xf32>
      %26 = tpu.iota {dimensions = array<i32: 1>} : vector<64x2xi32>
      %c0_i32_19 = arith.constant 0 : i32
      %27 = vector.broadcast %c0_i32_19 : i32 to vector<64x2xi32>
      %28 = arith.cmpi eq, %26, %27 : vector<64x2xi32>
      %29 = vector.shape_cast %22 : vector<64x1xf32> to vector<64x1xf32>
      %30 = vector.broadcast %29 : vector<64x1xf32> to vector<64x2xf32>
      %31 = vector.shape_cast %25 : vector<64x1xf32> to vector<64x1xf32>
      %32 = vector.broadcast %31 : vector<64x1xf32> to vector<64x2xf32>
      %33 = arith.select %28, %30, %32 : vector<64x2xi1>, vector<64x2xf32>
      %c0_20 = arith.constant 0 : index
      %c0_21 = arith.constant 0 : index
      %34 = vector.load %arg3[%c0_20, %c0_21] : memref<4x64xf32, #tpu.memory_space<vmem>>, vector<4x64xf32>
      %c0_22 = arith.constant 0 : index
      %c0_23 = arith.constant 0 : index
      %35 = vector.load %arg4[%c0_22, %c0_23] : memref<64x4xf32, #tpu.memory_space<vmem>>, vector<64x4xf32>
      %cst_24 = arith.constant dense<0.000000e+00> : vector<4x2xf32>
      %36 = tpu.matmul %34, %33, %cst_24 {dimension_numbers = #tpu.dot_dimension_numbers<[1], [0], [0], [1], [0, 0, 1, 1], [], []>} : vector<4x64xf32>, vector<64x2xf32>, vector<4x2xf32> -> vector<4x2xf32>
      %37 = arith.negf %36 : vector<4x2xf32>
      %38 = math.exp %37 : vector<4x2xf32>
      %cst_25 = arith.constant 1.000000e+00 : f32
      %39 = vector.broadcast %cst_25 : f32 to vector<4x2xf32>
      %40 = arith.addf %39, %38 : vector<4x2xf32>
      %41 = arith.divf %39, %40 : vector<4x2xf32>
      %42 = arith.mulf %36, %41 : vector<4x2xf32>
      %cst_26 = arith.constant dense<0.000000e+00> : vector<64x2xf32>
      %43 = tpu.matmul %35, %42, %cst_26 {dimension_numbers = #tpu.dot_dimension_numbers<[1], [0], [0], [1], [0, 0, 1, 1], [], []>} : vector<64x4xf32>, vector<4x2xf32>, vector<64x2xf32> -> vector<64x2xf32>
      %44 = vector.extract_strided_slice %43 {offsets = [0, 0], sizes = [64, 1], strides = [1, 1]} : vector<64x2xf32> to vector<64x1xf32>
      %45 = vector.extract_strided_slice %43 {offsets = [0, 1], sizes = [64, 1], strides = [1, 1]} : vector<64x2xf32> to vector<64x1xf32>
      %46 = arith.addf %44, %45 : vector<64x1xf32>
      %47 = arith.negf %46 : vector<64x1xf32>
      %48 = math.exp %47 : vector<64x1xf32>
      %cst_27 = arith.constant 1.000000e+00 : f32
      %49 = vector.broadcast %cst_27 : f32 to vector<64x1xf32>
      %50 = arith.addf %49, %48 : vector<64x1xf32>
      %51 = arith.divf %49, %50 : vector<64x1xf32>
      %c0_28 = arith.constant 0 : index
      %c0_29 = arith.constant 0 : index
      %c0_30 = arith.constant 0 : index
      %52 = vector.load %arg5[%c0_28, %c0_29, %c0_30] : memref<1x64x1xf32, #tpu.memory_space<vmem>>, vector<1x64x1xf32>
      %53 = vector.shape_cast %52 : vector<1x64x1xf32> to vector<64x1xf32>
      %54 = vector.shape_cast %51 : vector<64x1xf32> to vector<1x64x1xf32>
      tpu.vector_store %arg5[%c0_28, %c0_29, %c0_30], %54 {strides = array<i32>} : memref<1x64x1xf32, #tpu.memory_space<vmem>>, vector<1x64x1xf32>,
    } else {
    }
    return
  }
  func.func @transform_0(%arg0: i32, %arg1: i32) -> (i32, i32, i32) {
    %c0_i32 = arith.constant 0 : i32
    %c0_i32_0 = arith.constant 0 : i32
    return %arg0, %c0_i32, %arg1 : i32, i32, i32
  }
  func.func @transform_1(%arg0: i32, %arg1: i32) -> (i32, i32) {
    %c0_i32 = arith.constant 0 : i32
    %c0_i32_0 = arith.constant 0 : i32
    %c0_i32_1 = arith.constant 0 : i32
    return %c0_i32, %c0_i32_0 : i32, i32
  }
  func.func @transform_2(%arg0: i32, %arg1: i32) -> (i32, i32) {
    %c0_i32 = arith.constant 0 : i32
    %c0_i32_0 = arith.constant 0 : i32
    %c0_i32_1 = arith.constant 0 : i32
    return %c0_i32, %c0_i32_0 : i32, i32
  }
  func.func @transform_3(%arg0: i32, %arg1: i32) -> (i32, i32, i32) {
    %c0_i32 = arith.constant 0 : i32
    %c0_i32_0 = arith.constant 0 : i32
    %c0_i32_1 = arith.constant 0 : i32
    return %arg0, %c0_i32, %c0_i32_0 : i32, i32, i32
  }
}

</mosaic_0001>

<bundles_post_ra>
// kernel: tpu_custom_call.1
= control target key start
LH: loop header
LB: loop body
LE: loop exit
PB: predicated region body
PF: predicated region fallthrough
CT: control target
= control target key end

     0   :  { %8 = vsyncpa [#allocation5], 0  ;;  %s1238_s0 = inlined_call_operand.hbm [shape: f32[2,64,256], index: 0, kind: input, shape index: {}]   ;;  %s1239_s1 = inlined_call_operand.vmem [shape: f32[4,64], index: 1, kind: input, shape index: {}]   ;;  %s1240_s2 = inlined_call_operand.vmem [shape: f32[64,4], index: 2, kind: input, shape index: {}]   ;;  %s1241_s3 = inlined_call_operand.vmem [shape: f32[2,64,1], index: 3, kind: output, shape index: {}]  }
   0x1   :  { %10 = vsyncpa [#allocation5 + $0x1], 0  ;;  %s1064_s12 = smov 0   ;;  %s1066_s13 = smov 0  }
   0x2   :  { %s1068_s14 = smov 0   ;;  %s1070_s15 = smov 0  }
   0x3   :  { %s1072_s16 = smov 0   ;;  %s1074_s17 = smov 0  }
   0x4 LB: > { %s777_s18 = sadd.s32 4294967295, %s1036_s17   ;;  %s28_s19 = sadd.s32 1, %s1032_s16  ;;  %s1036_s17 = sphi %s1074_s17, %s16_s17   ;;  %s1032_s16 = sphi %s1072_s16, %s1249_s16   ;;  %s1028_s15 = sphi %s1070_s15, %s1248_s15   ;;  %s1024_s14 = sphi %s1068_s14, %s1247_s14   ;;  %s1020_s13 = sphi %s1066_s13, %s1246_s13   ;;  %s1016_s12 = sphi %s1064_s12, %s1245_s12  }
   0x5   : > { %p30_p0 = scmp.ge.s32.totalorder %s28_s19, 2  ;;  %s37_s20 = sadd.s32 1, %s1024_s14 }
   0x6   : > { %p44_p1 = scmp.ne.s32.totalorder %s1024_s14, %s1020_s13  ;;  %p45_p2 = scmp.eq.s32.totalorder %s1036_s17, 0 }
   0x7   : > { %s1251_s19 = smov (%p30_p0, %s28_s19), 0  ;;  %p50_p4 = scmp.ne.s32.totalorder %s1020_s13, %s1016_s12 }
   0x8   : > { %p1100_p3 = por %p45_p2, %p44_p1  ;;  %s32_s22 = ssub.s32 %s1032_s16, %s1251_s19 }
   0x9   : > { %p51_p5 = scmp.eq.s32.totalorder %s777_s18, 0  ;;  %p35_p6 = scmp.eq.s32.totalorder %s32_s22, 0 }
   0xa   : > { %p868_p8 = scmp.lt.s32.totalorder %s1036_s17, 2  ;;  %s148_s25 = sand.u32 1, %s1024_s14  }
   0xb   : > { %p1107_p7 = por %p51_p5, %p50_p4  ;;  %s809_s26 = sshll.u32 %s1032_s16, 11 }
   0xc   : > { %s1113_s24 = scalar_select %p35_p6, %s1024_s14, %s37_s20  }
   0xd   : > { %s781_s27 = sshll.u32 %s148_s25, 7  ;;  %s160_s30 = scalar_lea.hbm %s1238_s0, %s809_s26 }
   0xe   : > { %s152_s4 = scalar_lea.vmem [#allocation4], %s781_s27  ;;  %p1122_p9 = pnand %p868_p8, %p1100_p3 }
   0xf   : > { %s161_s5 = sshll.u32 %s152_s4, 4  ;;  %s149_s7 = scalar_lea.sflag [#allocation5], %s148_s25  ;;  %s162_s5 = int_to_ptr.vmem [resolvable:$true] %s161_s5 }
  0x10   : > { %p960_p10 = pneg %p1122_p9  ;;  %s971_s8 = scalar_lea.vmem %s162_s5, 2048 }
  0x11   : > { %p972_p11 = scmp.ne.s32.totalorder %s162_s5, %s971_s8  ;;  %s1038_s9 = smov [#allocation4]  }
  0x12   : > { %s976_s10 = sshll.u32 %s1038_s9, 4  ;;  %s977_s10 = int_to_ptr.vmem [resolvable:$false] %s976_s10 }
  0x13   : > { %p974_p12 = pnand %p972_p11, %p960_p10  ;;  %s978_s11 = scalar_lea.vmem %s977_s10, 4096 }
  0x14   : > { %p979_p0 = scmp.lt.s32.totalorder %s162_s5, %s977_s10  ;;  %p980_p1 = scmp.lt.s32.totalorder %s978_s11, %s971_s8 }
  0x15   : > { %p975_p13 = pneg %p974_p12 }
  0x16   : > { %p981_p2 = por %p980_p1, %p979_p0 }
  0x18   : > { %p982_p3 = pnand %p981_p2, %p975_p13 }
  0x1a   : > { %985 = shalt.err (!%p982_p3)
}
  0x1b   : > { %s1039_s12 = smov 256   ;;  %s1040_s18 = smov 16  }
  0x1c   : > { %867 = dma.hbm_to_vmem [thread:$0]  (!%p1122_p9), %s160_s30, 2048, %s162_s5, %s149_s7, %s1039_s12, %s1039_s12, %s1040_s18  }
  0x1d   : > { %p784_p4 = scmp.ge.s32.totalorder %s1036_s17, 1  ;;  %p169_p5 = scmp.lt.s32.totalorder %s1036_s17, 3 }
  0x1f   : > { %p170_p6 = pnand %p784_p4, %p169_p5 }
  0x20   : > { %s175_s20 = sand.u32 (!%p170_p6), 1, %s1020_s13  }
  0x21   : > { %173 = sbr.rel (%p170_p6) target bundleno = 801 (0x321), region = 32  ;;  %s785_s21 = sshll.u32 (!%p170_p6), %s175_s20, 7 }
  0x22   : > { %s176_s22 = scalar_lea.sflag (!%p170_p6), [#allocation5], %s175_s20  ;;  %s1133_s25 = scalar_lea.vmem (!%p170_p6), [#allocation4], %s785_s21 }
  0x26   : > { %1011 = dma.done.wait (%p1107_p7), %s176_s22, 2048  }
  0x27   : > { %1013 = vsyncadd (%p1107_p7), %s176_s22, 4294965248  ;;  %v242_v0 = vld [vmem:[%s1133_s25 + $0x70] sm:$0xff]  ;;  %v243_v1 = vld [vmem:[%s1133_s25 + $0x78] sm:$0xff]  ;;  %v1041_v20 = vmov 0.0   ;;  %vm1042_vm0 = vmmov 0   ;;  %v367_v33 = vlaneseq  ;;  %vm387_vm2 = vcmask 523264  }
  0x28   : > { %v240_v2 = vld [vmem:[%s1133_s25 + $0x60] sm:$0xff]  ;;  %v291_v3 = vmax.f32 %v242_v0, %v243_v1  ;;  %v283_v4 = vadd.f32 %v243_v1, %v242_v0  ;;  %v241_v5 = vld [vmem:[%s1133_s25 + $0x68] sm:$0xff]  ;;  %v238_v6 = vld [vmem:[%s1133_s25 + $0x50] sm:$0xff]  ;;  %829 = vmatprep.subr.mxu0 %v1041_v20  ;;  %845 = vmatprep.mubr.msk.f32.mxu0 %vm1042_vm0, %v1041_v20  ;;  %vm468_vm3 = vcmask 31744   ;;  %vm493_vm4 = vcmask 1043456   ;;  %s1043_s22 = smov 127  }
  0x29   : > { %v239_v7 = vld [vmem:[%s1133_s25 + $0x58] sm:$0xff]  ;;  %v282_v8 = vadd.f32 %v241_v5, %v240_v2  ;;  %v236_v10 = vld [vmem:[%s1133_s25 + $0x40] sm:$0xff]  ;;  %v237_v11 = vld [vmem:[%s1133_s25 + $0x48] sm:$0xff]  ;;  %v290_v12 = vmax.f32 %v240_v2, %v241_v5  ;;  %v368_v34 = vand.u32 127, %v367_v33  ;;  %p203_p7 = scmp.lt.s32.totalorder %s1028_s15, 1  ;;  %vm690_vm5 = vcmask 7168  }
  0x2a   : > { %365 = vmax.xlane.f32.xlu1 %v291_v3  ;;  %333 = vadd.xlane.f32.xlu0 %v283_v4  ;;  %v281_v9 = vadd.f32 %v239_v7, %v238_v6  ;;  %v280_v13 = vadd.f32 %v237_v11, %v236_v10  ;;  %v234_v14 = vld [vmem:[%s1133_s25 + $0x30] sm:$0xff]  ;;  %v235_v15 = vld [vmem:[%s1133_s25 + $0x38] sm:$0xff]  ;;  %v289_v16 = vmax.f32 %v238_v6, %v239_v7  ;;  %v232_v18 = vld [vmem:[%s1133_s25 + $0x20] sm:$0xff] }
  0x2b   : > { %v279_v17 = vadd.f32 %v235_v15, %v234_v14  ;;  %v233_v19 = vld [vmem:[%s1133_s25 + $0x28] sm:$0xff]  ;;  %v288_v21 = vmax.f32 %v236_v10, %v237_v11  ;;  %v230_v23 = vld [vmem:[%s1133_s25 + $0x10] sm:$0xff]  ;;  %v231_v24 = vld [vmem:[%s1133_s25 + $0x18] sm:$0xff]  ;;  %v287_v25 = vmax.f32 %v234_v14, %v235_v15  ;;  %vm369_vm1 = vcmp.eq.s32.totalorder %v368_v34, 0  ;;  %s1253_s15 = smov (!%p203_p7, %s1028_s15), 1 }
  0x2c   : > { %v278_v22 = vadd.f32 %v233_v19, %v232_v18  ;;  %v277_v26 = vadd.f32 %v231_v24, %v230_v23  ;;  %v228_v27 = vld [vmem:[%s1133_s25] sm:$0xff]  ;;  %v229_v28 = vld [vmem:[%s1133_s25 + $0x8] sm:$0xff]  ;;  %v286_v29 = vmax.f32 %v232_v18, %v233_v19  ;;  %v285_v31 = vmax.f32 %v230_v23, %v231_v24  ;;  %v382_v14 = vld [vmem:[%s1240_s2 + $0x18] sm:$0xff]  ;;  %s810_s25 = sshll.u32 %s1253_s15, 6 }
  0x2d   : > { %v276_v30 = vadd.f32 %v229_v28, %v228_v27  ;;  %v284_v32 = vmax.f32 %v228_v27, %v229_v28  ;;  %v378_v2 = vld [vmem:[%s1239_s1] sm:$0xf]  ;;  %v386_v18 = vld [vmem:[%s1240_s2 + $0x38] sm:$0xff]  ;;  %s207_s27 = scalar_lea.vmem %s1241_s3, %s810_s25 }
  0x2e   : > { %331 = vadd.xlane.f32.xlu0 %v282_v8  ;;  %329 = vadd.xlane.f32.xlu1 %v281_v9  ;;  %v379_v4 = vld [vmem:[%s1240_s2] sm:$0xff] }
  0x2f   : > { %850 = vmatprep.mubr.msk.f32.mxu1 %vm468_vm3, %v379_v4  ;;  %v383_v15 = vld [vmem:[%s1240_s2 + $0x20] sm:$0xff] }
  0x32   : > { %363 = vmax.xlane.f32.xlu0 %v290_v12  ;;  %327 = vadd.xlane.f32.xlu1 %v280_v13  ;;  %v380_v12 = vld [vmem:[%s1240_s2 + $0x8] sm:$0xff]  ;;  %v381_v13 = vld [vmem:[%s1240_s2 + $0x10] sm:$0xff] }
  0x36   : > { %361 = vmax.xlane.f32.xlu0 %v289_v16  ;;  %325 = vadd.xlane.f32.xlu1 %v279_v17  ;;  %v384_v16 = vld [vmem:[%s1240_s2 + $0x28] sm:$0xff]  ;;  %v385_v17 = vld [vmem:[%s1240_s2 + $0x30] sm:$0xff] }
  0x3a   : > { %359 = vmax.xlane.f32.xlu0 %v288_v21  ;;  %323 = vadd.xlane.f32.xlu1 %v278_v22 }
  0x3e   : > { %357 = vmax.xlane.f32.xlu0 %v287_v25  ;;  %321 = vadd.xlane.f32.xlu1 %v277_v26 }
  0x42   : > { %355 = vmax.xlane.f32.xlu0 %v286_v29  ;;  %319 = vadd.xlane.f32.xlu1 %v276_v30 }
  0x46   : > { %353 = vmax.xlane.f32.xlu0 %v285_v31  ;;  %351 = vmax.xlane.f32.xlu1 %v284_v32 }
  0xb3   : > { %v366_v35 = vpop.xlane.xlu1 %365  ;;  %v334_v36 = vpop.xlane.xlu0 %333 }
  0xb4   : > { %v342_v37 = vmul.f32 0.00390625, %v334_v36 }
  0xb6   : > { %v377_v38 = vsel %vm369_vm1, %v342_v37, %v366_v35 }
  0xb7   : > { %830 = vmatpush3.msra.mxu0 %v377_v38  ;;  %v332_v39 = vpop.xlane.xlu0 %331  ;;  %v330_v40 = vpop.xlane.xlu1 %329 }
  0xb8   : > { %831 = vmatprep.subr.mxu0 %v1041_v20  ;;  %v341_v41 = vmul.f32 0.00390625, %v332_v39  ;;  %v340_v45 = vmul.f32 0.00390625, %v330_v40 }
  0xbb   : > { %v364_v42 = vpop.xlane.xlu0 %363  ;;  %v328_v43 = vpop.xlane.xlu1 %327 }
  0xbc   : > { %v376_v44 = vsel %vm369_vm1, %v341_v41, %v364_v42  ;;  %v339_v49 = vmul.f32 0.00390625, %v328_v43 }
  0xbd   : > { %832 = vmatpush3.msra.mxu0 %v376_v44 }
  0xbe   : > { %833 = vmatprep.subr.mxu0 %v1041_v20 }
  0xbf   : > { %v362_v46 = vpop.xlane.xlu0 %361  ;;  %v326_v47 = vpop.xlane.xlu1 %325 }
  0xc0   : > { %v375_v48 = vsel %vm369_vm1, %v340_v45, %v362_v46  ;;  %v338_v53 = vmul.f32 0.00390625, %v326_v47 }
  0xc1   : > { %834 = vmatpush3.msra.mxu0 %v375_v48 }
  0xc2   : > { %835 = vmatprep.subr.mxu0 %v1041_v20 }
  0xc3   : > { %v360_v50 = vpop.xlane.xlu0 %359  ;;  %v324_v51 = vpop.xlane.xlu1 %323 }
  0xc4   : > { %v374_v52 = vsel %vm369_vm1, %v339_v49, %v360_v50  ;;  %v337_v57 = vmul.f32 0.00390625, %v324_v51 }
  0xc5   : > { %836 = vmatpush3.msra.mxu0 %v374_v52 }
  0xc6   : > { %837 = vmatprep.subr.mxu0 %v1041_v20 }
  0xc7   : > { %v358_v54 = vpop.xlane.xlu0 %357  ;;  %v322_v55 = vpop.xlane.xlu1 %321 }
  0xc8   : > { %v373_v56 = vsel %vm369_vm1, %v338_v53, %v358_v54  ;;  %v336_v61 = vmul.f32 0.00390625, %v322_v55 }
  0xc9   : > { %838 = vmatpush3.msra.mxu0 %v373_v56 }
  0xca   : > { %839 = vmatprep.subr.mxu0 %v1041_v20 }
  0xcb   : > { %v356_v58 = vpop.xlane.xlu0 %355  ;;  %v320_v59 = vpop.xlane.xlu1 %319 }
  0xcc   : > { %v372_v60 = vsel %vm369_vm1, %v337_v57, %v356_v58  ;;  %v335_v62 = vmul.f32 0.00390625, %v320_v59 }
  0xcd   : > { %840 = vmatpush3.msra.mxu0 %v372_v60 }
  0xce   : > { %841 = vmatprep.subr.mxu0 %v1041_v20 }
  0xcf   : > { %v354_v63 = vpop.xlane.xlu0 %353  ;;  %v352_v0 = vpop.xlane.xlu1 %351 }
  0xd0   : > { %v371_v1 = vsel %vm369_vm1, %v336_v61, %v354_v63  ;;  %v370_v3 = vsel %vm369_vm1, %v335_v62, %v352_v0 }
  0xd1   : > { %842 = vmatpush3.msra.mxu0 %v371_v1 }
  0xd2   : > { %843 = vmatprep.subr.mxu0 %v1041_v20 }
  0xd3   : > { %844 = vmatpush3.msra.mxu0 %v370_v3 }
  0xd4   : > { %846 = vmatmul.mubr.msk.f32.vlgmr.msra.gmra.mxu0 %vm387_vm2, %v378_v2 }
 0x194   : > { %v457_v5 = vpop.f32.mrf.mxu0 }
 0x195   : > { %v789_v6 = vmul.f32 -1.442695, %v457_v5 }
 0x196   : > { %v847_v7 = vpop.f32.mrf.mxu0 }
 0x197   : > { %922 = vpow2.f32 %v789_v6 }
 0x1a4   : > { %v923_v8 = vpop.eup %922 }
 0x1a5   : > { %v464_v9 = vadd.f32 1.0, %v923_v8 }
 0x1a7   : > { %924 = vrcp.f32 %v464_v9 }
 0x1b4   : > { %v925_v10 = vpop.eup %924 }
 0x1b5   : > { %v467_v11 = vmul.f32 %v925_v10, %v457_v5 }
 0x1b7   : > { %848 = vmatprep.subr.msk.mxu1 %vm493_vm4, %v467_v11 }
 0x1b8   : > { %849 = vmatpush3.msk.msra.mxu1 %vm493_vm4, %v467_v11 }
 0x1b9   : > { %851 = vmatmul.mubr.msk.f32.vlgmr.msra.gmra.mxu1 %vm468_vm3, %v380_v12 }
 0x1ba   : > { %853 = vmatprep.mubr.msk.f32.mxu1 %vm468_vm3, %v381_v13 }
 0x1bd   : > { %854 = vmatmul.mubr.msk.f32.gmra.mxu1 %vm468_vm3, %v382_v14 }
 0x1be   : > { %856 = vmatprep.mubr.msk.f32.mxu1 %vm468_vm3, %v383_v15 }
 0x1c1   : > { %857 = vmatmul.mubr.msk.f32.gmra.mxu1 %vm468_vm3, %v384_v16 }
 0x1c2   : > { %859 = vmatprep.mubr.msk.f32.mxu1 %vm468_vm3, %v385_v17 }
 0x1c5   : > { %860 = vmatmul.mubr.msk.f32.gmra.mxu1 %vm468_vm3, %v386_v18 }
 0x279   : > { %v852_v19 = vpop.f32.mrf.mxu1 }
 0x27a   : > { %612 = vrot.lane.b32.xlu1 %v852_v19, %s1043_s22 }
 0x27b   : > { %v563_v20 = vpop.f32.mrf.mxu1 }
 0x27c   : > { %610 = vrot.lane.b32.xlu0 %v563_v20, %s1043_s22 }
 0x27d   : > { %v855_v21 = vpop.f32.mrf.mxu1 }
 0x27e   : > { %616 = vrot.lane.b32.xlu1 %v855_v21, %s1043_s22 }
 0x27f   : > { %v573_v22 = vpop.f32.mrf.mxu1 }
 0x281   : > { %v858_v23 = vpop.f32.mrf.mxu1 }
 0x282   : > { %614 = vrot.lane.b32.xlu1 %v573_v22, %s1043_s22 }
 0x283   : > { %v583_v24 = vpop.f32.mrf.mxu1 }
 0x284   : > { %618 = vrot.lane.b32.xlu0 %v583_v24, %s1043_s22 }
 0x285   : > { %v861_v25 = vpop.f32.mrf.mxu1 }
 0x286   : > { %620 = vrot.lane.b32.xlu1 %v858_v23, %s1043_s22 }
 0x287   : > { %v593_v26 = vpop.f32.mrf.mxu1 }
 0x288   : > { %622 = vrot.lane.b32.xlu0 %v593_v26, %s1043_s22 }
 0x28a   : > { %624 = vrot.lane.b32.xlu1 %v861_v25, %s1043_s22 }
 0x2ec   : > { %v613_v27 = vpop.permute.xlu1 %612 }
 0x2ed   : > { %v635_v28 = vadd.f32 %v852_v19, %v613_v27 }
 0x2ee   : > { %v611_v29 = vpop.permute.xlu0 %610 }
 0x2ef   : > { %v800_v30 = vmul.f32 -1.442695, %v635_v28  ;;  %v634_v31 = vadd.f32 %v611_v29, %v563_v20 }
 0x2f0   : > { %v617_v32 = vpop.permute.xlu1 %616 }
 0x2f1   : > { %926 = vpow2.f32 %v800_v30  ;;  %v799_v33 = vmul.f32 -1.442695, %v634_v31  ;;  %v637_v34 = vadd.f32 %v855_v21, %v617_v32 }
 0x2f3   : > { %928 = vpow2.f32 %v799_v33  ;;  %v802_v35 = vmul.f32 -1.442695, %v637_v34 }
 0x2f4   : > { %v615_v36 = vpop.permute.xlu1 %614 }
 0x2f5   : > { %930 = vpow2.f32 %v802_v35  ;;  %v636_v37 = vadd.f32 %v615_v36, %v573_v22 }
 0x2f6   : > { %v619_v38 = vpop.permute.xlu0 %618 }
 0x2f7   : > { %v801_v39 = vmul.f32 -1.442695, %v636_v37  ;;  %v638_v40 = vadd.f32 %v619_v38, %v583_v24 }
 0x2f8   : > { %v621_v41 = vpop.permute.xlu1 %620 }
 0x2f9   : > { %932 = vpow2.f32 %v801_v39  ;;  %v803_v42 = vmul.f32 -1.442695, %v638_v40  ;;  %v639_v43 = vadd.f32 %v858_v23, %v621_v41 }
 0x2fa   : > { %v623_v44 = vpop.permute.xlu0 %622 }
 0x2fb   : > { %934 = vpow2.f32 %v803_v42  ;;  %v804_v45 = vmul.f32 -1.442695, %v639_v43  ;;  %v640_v46 = vadd.f32 %v623_v44, %v593_v26 }
 0x2fc   : > { %v625_v47 = vpop.permute.xlu1 %624 }
 0x2fd   : > { %936 = vpow2.f32 %v804_v45  ;;  %v805_v48 = vmul.f32 -1.442695, %v640_v46  ;;  %v641_v49 = vadd.f32 %v861_v25, %v625_v47 }
 0x2fe   : > { %v927_v50 = vpop.eup %926 }
 0x2ff   : > { %v667_v51 = vadd.f32 1.0, %v927_v50  ;;  %938 = vpow2.f32 %v805_v48  ;;  %v806_v52 = vmul.f32 -1.442695, %v641_v49 }
 0x300   : > { %v929_v53 = vpop.eup %928 }
 0x301   : > { %940 = vrcp.f32 %v667_v51  ;;  %v666_v54 = vadd.f32 1.0, %v929_v53 }
 0x302   : > { %v931_v55 = vpop.eup %930  ;;  %942 = vpow2.f32 %v806_v52 }
 0x303   : > { %944 = vrcp.f32 %v666_v54  ;;  %v669_v56 = vadd.f32 1.0, %v931_v55 }
 0x305   : > { %946 = vrcp.f32 %v669_v56 }
 0x306   : > { %v933_v57 = vpop.eup %932 }
 0x307   : > { %v668_v58 = vadd.f32 1.0, %v933_v57 }
 0x308   : > { %v935_v59 = vpop.eup %934 }
 0x309   : > { %948 = vrcp.f32 %v668_v58  ;;  %v670_v60 = vadd.f32 1.0, %v935_v59 }
 0x30a   : > { %v937_v61 = vpop.eup %936 }
 0x30b   : > { %950 = vrcp.f32 %v670_v60  ;;  %v671_v62 = vadd.f32 1.0, %v937_v61 }
 0x30c   : > { %v939_v63 = vpop.eup %938 }
 0x30d   : > { %952 = vrcp.f32 %v671_v62  ;;  %v672_v0 = vadd.f32 1.0, %v939_v63 }
 0x30e   : > { %v941_v1 = vpop.eup %940 }
 0x30f   : > { %v943_v2 = vpop.eup %942  ;;  %692 = vst.msk [vmem:[%s207_s27 + $0x8] sm:$0xff] %vm690_vm5, %v941_v1  ;;  %954 = vrcp.f32 %v672_v0 }
 0x310   : > { %v945_v3 = vpop.eup %944  ;;  %v673_v4 = vadd.f32 1.0, %v943_v2 }
 0x311   : > { %691 = vst.msk [vmem:[%s207_s27] sm:$0xff] %vm690_vm5, %v945_v3 }
 0x312   : > { %v947_v5 = vpop.eup %946  ;;  %956 = vrcp.f32 %v673_v4 }
 0x313   : > { %694 = vst.msk [vmem:[%s207_s27 + $0x18] sm:$0xff] %vm690_vm5, %v947_v5 }
 0x316   : > { %v949_v6 = vpop.eup %948 }
 0x317   : > { %693 = vst.msk [vmem:[%s207_s27 + $0x10] sm:$0xff] %vm690_vm5, %v949_v6 }
 0x318   : > { %v951_v7 = vpop.eup %950 }
 0x319   : > { %695 = vst.msk [vmem:[%s207_s27 + $0x20] sm:$0xff] %vm690_vm5, %v951_v7 }
 0x31a   : > { %v953_v8 = vpop.eup %952 }
 0x31b   : > { %696 = vst.msk [vmem:[%s207_s27 + $0x28] sm:$0xff] %vm690_vm5, %v953_v8 }
 0x31c   : > { %v955_v9 = vpop.eup %954 }
 0x31d   : > { %697 = vst.msk [vmem:[%s207_s27 + $0x30] sm:$0xff] %vm690_vm5, %v955_v9 }
 0x31f   : > { %v957_v10 = vpop.eup %956 }
 0x320   : > { %698 = vst.msk [vmem:[%s207_s27 + $0x38] sm:$0xff] %vm690_vm5, %v957_v10 }
 0x321 PF: > { %s16_s17 = sadd.s32 1, %s1036_s17   ;;  %s1245_s12 = smov %s1020_s13 }
 0x322   : > { %p13_p8 = scmp.ge.s32.totalorder %s16_s17, 4   ;;  %s1246_s13 = smov %s1024_s14 }
 0x323   : > { %s1247_s14 = smov %s1113_s24  ;;  %s1248_s15 = smov %s1032_s16 }
 0x324   : > { %s1249_s16 = smov %s1251_s19  ;;  %15 = sbr.rel (!%p13_p8) target bundleno = 4 (0x4), region = 80 }
 0x329   :  { %720 = vsyncpa [#allocation5], 1 }
 0x32a   :  { %722 = vsyncpa [#allocation5 + $0x1], 1 }

</bundles_post_ra>
